<compile_context>
chip_gen: v5e
topology: v5e:2x2
jax: 0.10.0
libtpu: 0.0.40
codegen_flags: <defaults>
</compile_context>

<pallas_src>
import jax
import jax.numpy as jnp
from jax.experimental import pallas as pl
from jax.experimental.pallas import tpu as pltpu


# ----------------------------------------------------------------------------
# Chip introspection (conservative fallbacks if anything is unavailable)
# ----------------------------------------------------------------------------
def _device_kind() -> str:
    try:
        return (jax.devices()[0].device_kind or "").lower()
    except Exception:
        return ""


def _is_multi_tensorcore(kind: str) -> bool:
    # v7x has 2 TensorCores per chip; v5e/v6e have 1 (their grid is a serial loop).
    return "v7" in kind


def _concat_vmem_budget(kind: str):
    """(VMEM budget for the concat-path tiles, optional vmem_limit_bytes)."""
    if "v6" in kind:
        # v6e: 128 MiB physical / 32 MiB scoped default -> roomier tiles plus an
        # explicit scoped-VMEM override.
        return 24 * 1024 * 1024, 64 * 1024 * 1024
    # v5e (16 MiB scoped default) and v7x (64 MiB physical/TC): stay conservative.
    return 12 * 1024 * 1024, None


# ----------------------------------------------------------------------------
# Class-block sizing
# ----------------------------------------------------------------------------
def _pick_class_block(n_cls, seq_len, ctx_dim, itemsize, *,
                      vmem_budget_bytes, multi_tensorcore, max_block=512):
    """Concat path: largest class block whose double-buffered input+output tiles
    (~4 * seq * D * itemsize bytes per class) fit the VMEM budget.  No divisor
    constraint -- the grid uses pl.cdiv and BlockSpec masks the ragged tail."""
    per_class = 4 * seq_len * ctx_dim * itemsize
    cap = max(1, min(n_cls, max_block, vmem_budget_bytes // per_class))
    if multi_tensorcore and n_cls > 1:
        # Only force >=2 grid steps where a second TensorCore can pick them up.
        cap = min(cap, pl.cdiv(n_cls, 2))
    return cap


def _pick_ctx_block(n_cls, n_ctx, ctx_dim, itemsize, *,
                    vmem_budget_bytes=8 * 1024 * 1024):
    """In-place path: only one resident (cb, n_ctx, D) scratch tile lives in VMEM
    (~n_ctx * D * itemsize bytes per class; nothing is double-buffered), so the
    block can be much larger than the concat path's.  cb must divide n_cls
    because the writeback is a manual (unmasked) DMA of fixed size."""
    per_class = n_ctx * ctx_dim * itemsize
    cap = max(1, min(n_cls, vmem_budget_bytes // per_class))
    if cap >= n_cls:
        return n_cls
    return max(d for d in range(1, cap + 1) if n_cls % d == 0)


# ----------------------------------------------------------------------------
# Kernel 1: class-blocked concat (drop-in forward())
# ----------------------------------------------------------------------------
def _prompt_concat_kernel(prefix_ref, ctx_ref, suffix_ref, out_ref):
    # prefix_ref : (CB, 1,     D)  per-class SOS-token embeddings
    # ctx_ref    : (n_ctx,     D)  shared learnable context (constant block)
    # suffix_ref : (CB, n_suf, D)  per-class classname/EOS/pad embeddings
    # out_ref    : (CB, seq,   D)  assembled prompts for this class block
    cb, _, d = out_ref.shape
    n_ctx = ctx_ref.shape[0]
    ctx_b = jnp.broadcast_to(ctx_ref[...][None, :, :], (cb, n_ctx, d))
    # Merge prefix + ctx into one store region starting at sublane offset 0
    # (one fewer set of masked partial stores); only the suffix store starts
    # at the odd offset 1 + n_ctx.
    out_ref[:, 0:1 + n_ctx, :] = jnp.concatenate([prefix_ref[...], ctx_b], axis=1)
    out_ref[:, 1 + n_ctx:, :] = suffix_ref[...]


def prompt_learner_forward(token_prefix, ctx, token_suffix, *, class_block=None):
    """PromptLearner.forward() (class_token_position='end', shared 2-D ctx).

    token_prefix : (n_cls, 1, ctx_dim)
    ctx          : (n_ctx, ctx_dim)         generic context (ctx.dim()==2 branch)
    token_suffix : (n_cls, n_suffix, ctx_dim)
    returns      : (n_cls, 1 + n_ctx + n_suffix, ctx_dim)
    """
    assert ctx.ndim == 2, (
        "Only the shared-context (ctx.ndim == 2) 'end' position is implemented; "
        "class-specific 3-D ctx (CSC) is not supported by this kernel.")
    n_cls, _, ctx_dim = token_prefix.shape
    n_ctx = ctx.shape[0]
    n_suf = token_suffix.shape[1]
    seq_len = 1 + n_ctx + n_suf
    dtype = token_prefix.dtype
    itemsize = jnp.dtype(dtype).itemsize

    kind = _device_kind()
    vmem_budget, vmem_limit = _concat_vmem_budget(kind)
    if class_block is None:
        class_block = _pick_class_block(
            n_cls, seq_len, ctx_dim, itemsize,
            vmem_budget_bytes=vmem_budget,
            multi_tensorcore=_is_multi_tensorcore(kind))
    cb = int(class_block)
    grid = (pl.cdiv(n_cls, cb),)  # ragged last block is masked by BlockSpec

    cp_kwargs = dict(dimension_semantics=("parallel",))
    if vmem_limit is not None:
        cp_kwargs["vmem_limit_bytes"] = vmem_limit

    return pl.pallas_call(
        _prompt_concat_kernel,
        out_shape=jax.ShapeDtypeStruct((n_cls, seq_len, ctx_dim), dtype),
        grid=grid,
        in_specs=[
            pl.BlockSpec((cb, 1, ctx_dim), lambda i: (i, 0, 0)),
            # Constant index_map: the shared ctx block is fetched once, reused.
            pl.BlockSpec((n_ctx, ctx_dim), lambda i: (0, 0)),
            pl.BlockSpec((cb, n_suf, ctx_dim), lambda i: (i, 0, 0)),
        ],
        out_specs=pl.BlockSpec((cb, seq_len, ctx_dim), lambda i: (i, 0, 0)),
        compiler_params=pltpu.CompilerParams(**cp_kwargs),
    )(token_prefix, ctx.astype(dtype), token_suffix)


# ----------------------------------------------------------------------------
# Kernel 2: template + in-place ctx writeback (training hot path)
# ----------------------------------------------------------------------------
def make_prompt_template(token_prefix, token_suffix, n_ctx):
    """One-time (module-init) assembly of prefix + <ctx hole> + suffix.
    The n_ctx hole rows are always fully overwritten by the kernel."""
    n_cls, _, ctx_dim = token_prefix.shape
    dtype = token_prefix.dtype
    ctx_hole = jnp.zeros((n_cls, n_ctx, ctx_dim), dtype=dtype)
    return jnp.concatenate([token_prefix, ctx_hole, token_suffix], axis=1)


def _ctx_writeback_kernel(template_ref, ctx_ref, out_ref, ctx_tile, sems):
    # template_ref : (n_cls, seq, D) HBM, aliased to out_ref (carries static rows)
    # ctx_ref      : (n_ctx, D)      VMEM, shared learnable context
    # out_ref      : (n_cls, seq, D) HBM, full prompts buffer
    # ctx_tile     : (CB, n_ctx, D)  VMEM scratch (persists across grid steps)
    # sems         : DMA semaphores, shape (2,) -> 2 writebacks in flight
    del template_ref  # static prefix/suffix rows are already in place via the alias
    cb, n_ctx, d = ctx_tile.shape
    blk = pl.program_id(0)
    nblk = pl.num_programs(0)
    slot = blk % 2

    # Fill the shared-ctx tile ONCE.  Safe: the grid axis is 'arbitrary'
    # (sequential on one core) and scratch persists across grid steps.
    @pl.when(blk == 0)
    def _():
        ctx_tile[...] = jnp.broadcast_to(ctx_ref[...][None, :, :], (cb, n_ctx, d))

    # One strided DMA writes only rows [1, 1+n_ctx) of each prompt in this
    # class block (prefix/suffix bytes are never touched).
    pltpu.make_async_copy(
        ctx_tile,
        out_ref.at[pl.ds(blk * cb, cb), pl.ds(1, n_ctx), :],
        sems.at[slot]).start()

    # Deferred drain: wait for the PREVIOUS block's DMA instead of our own, so
    # outbound HBM writes stay back-to-back.  (All blocks have identical copy
    # sizes, so a fixed-slice descriptor is a valid wait handle for that slot.)
    @pl.when(blk > 0)
    def _():
        pltpu.make_async_copy(
            ctx_tile,
            out_ref.at[pl.ds(0, cb), pl.ds(1, n_ctx), :],
            sems.at[1 - slot]).wait()

    # Final step: also drain our own DMA so all writes land before returning.
    @pl.when(blk == nblk - 1)
    def _():
        pltpu.make_async_copy(
            ctx_tile,
            out_ref.at[pl.ds(0, cb), pl.ds(1, n_ctx), :],
            sems.at[slot]).wait()


def prompt_learner_forward_inplace(template, ctx, *, class_block=None):
    """forward() when the static template is kept around: only the n_ctx
    context rows per class are (re)written.  Wrap in
    jax.jit(..., donate_argnums=(0,)) so the template buffer is truly updated
    in place (without donation XLA copies the whole template first)."""
    assert ctx.ndim == 2, (
        "Only the shared-context (ctx.ndim == 2) 'end' position is implemented.")
    n_cls, seq_len, ctx_dim = template.shape
    n_ctx = ctx.shape[0]
    dtype = template.dtype
    itemsize = jnp.dtype(dtype).itemsize

    if class_block is None:
        class_block = _pick_ctx_block(n_cls, n_ctx, ctx_dim, itemsize)
    cb = int(class_block)
    assert n_cls % cb == 0, (
        "class_block must divide n_cls for the in-place path (the writeback is "
        "a manual, unmasked DMA of fixed size).")
    grid = (n_cls // cb,)

    return pl.pallas_call(
        _ctx_writeback_kernel,
        out_shape=jax.ShapeDtypeStruct((n_cls, seq_len, ctx_dim), dtype),
        grid=grid,
        in_specs=[
            pl.BlockSpec(memory_space=pl.ANY),                 # template (aliased)
            pl.BlockSpec((n_ctx, ctx_dim), lambda i: (0, 0)),  # shared ctx in VMEM
        ],
        out_specs=pl.BlockSpec(memory_space=pl.ANY),
        scratch_shapes=[
            pltpu.VMEM((cb, n_ctx, ctx_dim), dtype),
            pltpu.SemaphoreType.DMA((2,)),
        ],
        input_output_aliases={0: 0},
        compiler_params=pltpu.CompilerParams(
            dimension_semantics=("arbitrary",)),   # sequential: needed for the
                                                   # fill-once + cross-step DMA
    )(template, ctx.astype(dtype))


# ----------------------------------------------------------------------------
# Demo / self-test
# ----------------------------------------------------------------------------
if __name__ == "__main__":
    # Small shapes consistent with the module: n_cls classes, n_ctx context
    # tokens, seq_len total tokens, ctx_dim hidden width.
    n_cls, n_ctx, seq_len, ctx_dim = 10, 4, 16, 128
    n_suf = seq_len - 1 - n_ctx

    key = jax.random.PRNGKey(0)
    k_emb, k_ctx = jax.random.split(key)

    for dtype in (jnp.float32, jnp.bfloat16):   # bf16 halves the HBM bytes moved
        # Synthetic "token_embedding(tokenized_prompts)": (n_cls, seq, ctx_dim)
        embedding = jax.random.normal(
            k_emb, (n_cls, seq_len, ctx_dim), dtype=jnp.float32).astype(dtype)
        token_prefix = embedding[:, :1, :]            # SOS embeddings
        token_suffix = embedding[:, 1 + n_ctx:, :]    # classname/EOS/pad embeddings
        # Learnable generic context, init std=0.02 (nn.init.normal_ equivalent).
        ctx = (0.02 * jax.random.normal(
            k_ctx, (n_ctx, ctx_dim), dtype=jnp.float32)).astype(dtype)

        # Pure-JAX reference ('end' position) — bit-exact expectation.
        ref = jnp.concatenate(
            [token_prefix,
             jnp.broadcast_to(ctx[None, :, :], (n_cls, n_ctx, ctx_dim)),
             token_suffix], axis=1)

        # Path 1a: class-blocked concat kernel, auto block size.
        prompts = jax.block_until_ready(
            prompt_learner_forward(token_prefix, ctx, token_suffix))
        assert prompts.shape == (n_cls, seq_len, ctx_dim)
        assert prompts.dtype == dtype
        assert jnp.array_equal(prompts, ref), f"concat kernel mismatch ({dtype})"

        # Path 1b: forced class_block=3 (does not divide n_cls=10) exercises the
        # cdiv grid with a ragged, BlockSpec-masked last block.
        prompts_r = jax.block_until_ready(
            prompt_learner_forward(token_prefix, ctx, token_suffix, class_block=3))
        assert jnp.array_equal(prompts_r, ref), f"ragged concat mismatch ({dtype})"

        # Path 2a: template built once + in-place ctx writeback (hot path).
        inplace_fn = jax.jit(prompt_learner_forward_inplace,
                             donate_argnums=(0,),
                             static_argnames=("class_block",))
        template = make_prompt_template(token_prefix, token_suffix, n_ctx)
        prompts2 = jax.block_until_ready(inplace_fn(template, ctx))
        assert prompts2.shape == (n_cls, seq_len, ctx_dim)
        assert prompts2.dtype == dtype
        assert jnp.array_equal(prompts2, ref), f"in-place kernel mismatch ({dtype})"

        # Path 2b: forced class_block=5 (divides 10) exercises the pipelined
        # (deferred-wait) multi-block writeback DMA path.
        template2 = make_prompt_template(token_prefix, token_suffix, n_ctx)
        prompts3 = jax.block_until_ready(inplace_fn(template2, ctx, class_block=5))
        assert jnp.array_equal(prompts3, ref), f"pipelined in-place mismatch ({dtype})"

    print("KERNEL_OK")
</pallas_src>

<mosaic_0001>
module attributes {stable_mosaic.version = 11 : i64} {
  func.func @_prompt_concat_kernel(%arg0: i32, %arg1: memref<10x1x128xf32, #tpu.memory_space<vmem>>, %arg2: memref<4x128xf32, #tpu.memory_space<vmem>>, %arg3: memref<10x11x128xf32, #tpu.memory_space<vmem>>, %arg4: memref<10x16x128xf32, #tpu.memory_space<vmem>>) attributes {dimension_semantics = [#tpu.dimension_semantics<parallel>], iteration_bounds = array<i64: 1>, scalar_prefetch = 0 : i64, scratch_operands = 0 : i64, tpu.core_type = #tpu.core_type<tc>, window_params = [{transform_indices = @transform_0, window_bounds = array<i64: 10, 1, 128>}, {pipeline_mode = #tpu.pipeline_mode<synchronous>, transform_indices = @transform_1, window_bounds = array<i64: 4, 128>}, {transform_indices = @transform_2, window_bounds = array<i64: 10, 11, 128>}, {transform_indices = @transform_3, window_bounds = array<i64: 10, 16, 128>}]} {
    %c0 = arith.constant 0 : index
    %c0_0 = arith.constant 0 : index
    %0 = vector.load %arg2[%c0, %c0_0] : memref<4x128xf32, #tpu.memory_space<vmem>>, vector<4x128xf32>
    %1 = vector.shape_cast %0 : vector<4x128xf32> to vector<1x4x128xf32>
    %2 = vector.shape_cast %1 : vector<1x4x128xf32> to vector<1x4x128xf32>
    %3 = vector.broadcast %2 : vector<1x4x128xf32> to vector<10x4x128xf32>
    %c0_1 = arith.constant 0 : index
    %c0_2 = arith.constant 0 : index
    %c0_3 = arith.constant 0 : index
    %4 = vector.load %arg1[%c0_1, %c0_2, %c0_3] : memref<10x1x128xf32, #tpu.memory_space<vmem>>, vector<10x1x128xf32>
    %5 = tpu.concatenate %4, %3 in 1 : vector<10x1x128xf32>, vector<10x4x128xf32> -> vector<10x5x128xf32>
    %c0_4 = arith.constant 0 : index
    %c0_5 = arith.constant 0 : index
    %c0_6 = arith.constant 0 : index
    %6 = vector.load %arg4[%c0_4, %c0_5, %c0_6] : memref<10x16x128xf32, #tpu.memory_space<vmem>>, vector<10x5x128xf32>
    tpu.vector_store %arg4[%c0_4, %c0_5, %c0_6], %5 {strides = array<i32>} : memref<10x16x128xf32, #tpu.memory_space<vmem>>, vector<10x5x128xf32>,
    %c0_7 = arith.constant 0 : index
    %c0_8 = arith.constant 0 : index
    %c0_9 = arith.constant 0 : index
    %7 = vector.load %arg3[%c0_7, %c0_8, %c0_9] : memref<10x11x128xf32, #tpu.memory_space<vmem>>, vector<10x11x128xf32>
    %c0_10 = arith.constant 0 : index
    %c5 = arith.constant 5 : index
    %c0_11 = arith.constant 0 : index
    %8 = vector.load %arg4[%c0_10, %c5, %c0_11] : memref<10x16x128xf32, #tpu.memory_space<vmem>>, vector<10x11x128xf32>
    tpu.vector_store %arg4[%c0_10, %c5, %c0_11], %7 {strides = array<i32>} : memref<10x16x128xf32, #tpu.memory_space<vmem>>, vector<10x11x128xf32>,
    return
  }
  func.func @transform_0(%arg0: i32) -> (i32, i32, i32) {
    %c0_i32 = arith.constant 0 : i32
    %c0_i32_0 = arith.constant 0 : i32
    %c0_i32_1 = arith.constant 0 : i32
    return %arg0, %c0_i32, %c0_i32_0 : i32, i32, i32
  }
  func.func @transform_1(%arg0: i32) -> (i32, i32) {
    %c0_i32 = arith.constant 0 : i32
    %c0_i32_0 = arith.constant 0 : i32
    %c0_i32_1 = arith.constant 0 : i32
    return %c0_i32, %c0_i32_0 : i32, i32
  }
  func.func @transform_2(%arg0: i32) -> (i32, i32, i32) {
    %c0_i32 = arith.constant 0 : i32
    %c0_i32_0 = arith.constant 0 : i32
    %c0_i32_1 = arith.constant 0 : i32
    return %arg0, %c0_i32, %c0_i32_0 : i32, i32, i32
  }
  func.func @transform_3(%arg0: i32) -> (i32, i32, i32) {
    %c0_i32 = arith.constant 0 : i32
    %c0_i32_0 = arith.constant 0 : i32
    %c0_i32_1 = arith.constant 0 : i32
    return %arg0, %c0_i32, %c0_i32_0 : i32, i32, i32
  }
}

</mosaic_0001>

<bundles_post_ra>
// kernel: tpu_custom_call.1
= control target key start
LH: loop header
LB: loop body
LE: loop exit
PB: predicated region body
PF: predicated region fallthrough
CT: control target
= control target key end

     0   :  { %8 = vsyncpa [#allocation3], 0  ;;  %s321_s0 = inlined_call_operand.hbm [shape: f32[10,1,128], index: 0, kind: input, shape index: {}]   ;;  %s322_s1 = inlined_call_operand.hbm [shape: f32[4,128], index: 1, kind: input, shape index: {}]   ;;  %s323_s2 = inlined_call_operand.hbm [shape: f32[10,11,128], index: 2, kind: input, shape index: {}]   ;;  %s324_s3 = inlined_call_operand.hbm [shape: f32[10,16,128], index: 3, kind: output, shape index: {}]  }
   0x1   :  { %9 = vsyncpa [#allocation6], 0  ;;  %s29_s14 = sshll.u32 %s322_s1, 4  ;;  %s30_s14 = int_to_ptr.hbm [resolvable:$true] %s29_s14 }
   0x2   :  { %10 = vsyncpa [#allocation4], 0  ;;  %s265_s15 = smov [#allocation5]   ;;  %s15_s19 = sshll.u32 %s321_s0, 4  ;;  %s16_s19 = int_to_ptr.hbm [resolvable:$true] %s15_s19 }
   0x3   :  { %s31_s16 = sshll.u32 %s265_s15, 4  ;;  %s266_s20 = smov [#allocation2]   ;;  %s32_s16 = int_to_ptr.vmem [resolvable:$true] %s31_s16 }
   0x4   :  { %34 = dma.hbm_to_vmem [thread:$0]  %s30_s14, 64, %s32_s16, [#allocation6]  }
   0x5   :  { %s17_s21 = sshll.u32 %s266_s20, 4  ;;  %s267_s22 = smov 16   ;;  %s18_s21 = int_to_ptr.vmem [resolvable:$true] %s17_s21 }
   0x6   :  { %s268_s23 = smov 1   ;;  %s39_s1 = sshll.u32 %s323_s2, 4  ;;  %s40_s1 = int_to_ptr.hbm [resolvable:$true] %s39_s1 }
   0x7   :  { %23 = dma.hbm_to_vmem [thread:$0]  %s16_s19, 160, %s18_s21, [#allocation3], %s267_s22, %s267_s22, %s268_s23  }
   0x8   :  { %s269_s26 = smov [#allocation7]   ;;  %s270_s28 = smov 128  }
   0x9   :  { %s41_s27 = sshll.u32 %s269_s26, 4  ;;  %s271_s29 = smov 8   ;;  %s42_s27 = int_to_ptr.vmem [resolvable:$true] %s41_s27 }
   0xa   :  { %47 = dma.hbm_to_vmem [thread:$0]  %s40_s1, 2560, %s42_s27, [#allocation6], %s270_s28, %s270_s28, %s271_s29  }
   0xb   :  { %259 = dma.done.wait [#allocation3], 160  }
   0xc   :  { %260 = vsyncadd [#allocation3], 4294967136 }
   0xd   :  { %261 = dma.done.wait [#allocation6], 2624  }
   0xe   :  { %262 = vsyncadd [#allocation6], 4294964672  ;;  %vm74_vm0 = vcmask 1040384   ;;  %v60_v0 = vld [vmem:[#allocation5] sm:$0xf]  ;;  %v95_v22 = vld [vmem:[#allocation7] sm:$0xff] }
   0xf   :  { %v61_v1 = vld [vmem:[#allocation2] sm:$0x1]  ;;  %v62_v2 = vld [vmem:[#allocation2 + $0x1] sm:$0x1]  ;;  %v72_v3 = vrot.slane %v60_v0, 7  ;;  %115 = vst [vmem:[#allocation8 + $0x5] sm:$0xff] %v95_v22 }
  0x10   :  { %v63_v4 = vld [vmem:[#allocation2 + $0x2] sm:$0x1]  ;;  %v64_v5 = vld [vmem:[#allocation2 + $0x3] sm:$0x1]  ;;  %v65_v6 = vld [vmem:[#allocation2 + $0x4] sm:$0x1] }
  0x11   :  { %v75_v7 = vsel %vm74_vm0, %v61_v1, %v72_v3  ;;  %v76_v8 = vsel %vm74_vm0, %v62_v2, %v72_v3  ;;  %v77_v9 = vsel %vm74_vm0, %v63_v4, %v72_v3  ;;  %v66_v10 = vld [vmem:[#allocation2 + $0x5] sm:$0x1]  ;;  %v78_v11 = vsel %vm74_vm0, %v64_v5, %v72_v3  ;;  %v67_v12 = vld [vmem:[#allocation2 + $0x6] sm:$0x1]  ;;  %v68_v14 = vld [vmem:[#allocation2 + $0x7] sm:$0x1] }
  0x12   :  { %85 = vst [vmem:[#allocation8] sm:$0x1f] %v75_v7  ;;  %v79_v13 = vsel %vm74_vm0, %v65_v6, %v72_v3  ;;  %v80_v15 = vsel %vm74_vm0, %v66_v10, %v72_v3  ;;  %v69_v16 = vld [vmem:[#allocation2 + $0x8] sm:$0x1]  ;;  %v81_v17 = vsel %vm74_vm0, %v67_v12, %v72_v3  ;;  %v70_v18 = vld [vmem:[#allocation2 + $0x9] sm:$0x1]  ;;  %v82_v19 = vsel %vm74_vm0, %v68_v14, %v72_v3 }
  0x13   :  { %86 = vst [vmem:[#allocation8 + $0x10] sm:$0x1f] %v76_v8  ;;  %v83_v20 = vsel %vm74_vm0, %v69_v16, %v72_v3  ;;  %v84_v21 = vsel %vm74_vm0, %v70_v18, %v72_v3  ;;  %v96_v23 = vld [vmem:[#allocation7 + $0x8] sm:$0x7]  ;;  %v97_v24 = vld [vmem:[#allocation7 + $0x10] sm:$0xff]  ;;  %v99_v26 = vld [vmem:[#allocation7 + $0x20] sm:$0xff] }
  0x14   :  { %87 = vst [vmem:[#allocation8 + $0x20] sm:$0x1f] %v77_v9  ;;  %v98_v25 = vld [vmem:[#allocation7 + $0x18] sm:$0x7]  ;;  %v100_v27 = vld [vmem:[#allocation7 + $0x28] sm:$0x7] }
  0x15   :  { %88 = vst [vmem:[#allocation8 + $0x30] sm:$0x1f] %v78_v11  ;;  %v101_v28 = vld [vmem:[#allocation7 + $0x30] sm:$0xff]  ;;  %v102_v29 = vld [vmem:[#allocation7 + $0x38] sm:$0x7]  ;;  %v103_v30 = vld [vmem:[#allocation7 + $0x40] sm:$0xff] }
  0x16   :  { %89 = vst [vmem:[#allocation8 + $0x40] sm:$0x1f] %v79_v13  ;;  %v104_v31 = vld [vmem:[#allocation7 + $0x48] sm:$0x7]  ;;  %v105_v32 = vld [vmem:[#allocation7 + $0x50] sm:$0xff]  ;;  %v107_v34 = vld [vmem:[#allocation7 + $0x60] sm:$0xff] }
  0x17   :  { %90 = vst [vmem:[#allocation8 + $0x50] sm:$0x1f] %v80_v15  ;;  %v106_v33 = vld [vmem:[#allocation7 + $0x58] sm:$0x7]  ;;  %v108_v35 = vld [vmem:[#allocation7 + $0x68] sm:$0x7] }
  0x18   :  { %91 = vst [vmem:[#allocation8 + $0x60] sm:$0x1f] %v81_v17  ;;  %v109_v36 = vld [vmem:[#allocation7 + $0x70] sm:$0xff]  ;;  %v110_v37 = vld [vmem:[#allocation7 + $0x78] sm:$0x7]  ;;  %v111_v38 = vld [vmem:[#allocation7 + $0x80] sm:$0xff] }
  0x19   :  { %92 = vst [vmem:[#allocation8 + $0x70] sm:$0x1f] %v82_v19  ;;  %v112_v39 = vld [vmem:[#allocation7 + $0x88] sm:$0x7]  ;;  %s272_s0 = smov [#allocation8]   ;;  %s141_s5 = sshll.u32 %s324_s3, 4  ;;  %s142_s5 = int_to_ptr.hbm [resolvable:$true] %s141_s5 }
  0x1a   :  { %93 = vst [vmem:[#allocation8 + $0x80] sm:$0x1f] %v83_v20  ;;  %s139_s2 = sshll.u32 %s272_s0, 4  ;;  %v113_v40 = vld [vmem:[#allocation7 + $0x90] sm:$0xff]  ;;  %v114_v41 = vld [vmem:[#allocation7 + $0x98] sm:$0x7]  ;;  %s140_s2 = int_to_ptr.vmem [resolvable:$true] %s139_s2 }
  0x1b   :  { %94 = vst [vmem:[#allocation8 + $0x90] sm:$0x1f] %v84_v21 }
  0x1c   :  { %116 = vst [vmem:[#allocation8 + $0xd] sm:$0x7] %v96_v23 }
  0x1d   :  { %117 = vst [vmem:[#allocation8 + $0x15] sm:$0xff] %v97_v24 }
  0x1e   :  { %118 = vst [vmem:[#allocation8 + $0x1d] sm:$0x7] %v98_v25 }
  0x1f   :  { %119 = vst [vmem:[#allocation8 + $0x25] sm:$0xff] %v99_v26 }
  0x20   :  { %120 = vst [vmem:[#allocation8 + $0x2d] sm:$0x7] %v100_v27 }
  0x21   :  { %121 = vst [vmem:[#allocation8 + $0x35] sm:$0xff] %v101_v28 }
  0x22   :  { %122 = vst [vmem:[#allocation8 + $0x3d] sm:$0x7] %v102_v29 }
  0x23   :  { %123 = vst [vmem:[#allocation8 + $0x45] sm:$0xff] %v103_v30 }
  0x24   :  { %124 = vst [vmem:[#allocation8 + $0x4d] sm:$0x7] %v104_v31 }
  0x25   :  { %125 = vst [vmem:[#allocation8 + $0x55] sm:$0xff] %v105_v32 }
  0x26   :  { %126 = vst [vmem:[#allocation8 + $0x5d] sm:$0x7] %v106_v33 }
  0x27   :  { %127 = vst [vmem:[#allocation8 + $0x65] sm:$0xff] %v107_v34 }
  0x28   :  { %128 = vst [vmem:[#allocation8 + $0x6d] sm:$0x7] %v108_v35 }
  0x29   :  { %129 = vst [vmem:[#allocation8 + $0x75] sm:$0xff] %v109_v36 }
  0x2a   :  { %130 = vst [vmem:[#allocation8 + $0x7d] sm:$0x7] %v110_v37 }
  0x2b   :  { %131 = vst [vmem:[#allocation8 + $0x85] sm:$0xff] %v111_v38 }
  0x2c   :  { %132 = vst [vmem:[#allocation8 + $0x8d] sm:$0x7] %v112_v39 }
  0x2d   :  { %133 = vst [vmem:[#allocation8 + $0x95] sm:$0xff] %v113_v40 }
  0x2e   :  { %134 = vst [vmem:[#allocation8 + $0x9d] sm:$0x7] %v114_v41 }
  0x2f   :  { %147 = dma.vmem_to_hbm [thread:$0]  %s140_s2, 2560, %s142_s5, [#allocation4], %s270_s28, %s270_s28, %s271_s29  }
  0x30   :  { %263 = dma.done.wait [#allocation4], 2560  }
  0x31   :  { %264 = vsyncadd [#allocation4], 4294964736 }
  0x32   :  { %152 = vsyncpa [#allocation3], 1 }
  0x33   :  { %153 = vsyncpa [#allocation6], 1 }
  0x34   :  { %154 = vsyncpa [#allocation4], 1 }

</bundles_post_ra>
